<compile_context>
chip_gen: v7x
topology: tpu7x:2x2x1
jax: 0.10.0
libtpu: 0.0.40
codegen_flags: <defaults>
</compile_context>

<pallas_src>
import jax
import jax.numpy as jnp
from jax.experimental import pallas as pl
from jax.experimental.pallas import tpu as pltpu

IN_FEATURES = 5
HIDDEN = 64


def _mlp_softmax_kernel(x_ref, w1_ref, b1_ref, w2_ref, b2_ref, w3_ref, b3_ref, o_ref):
    """Forward pass for one batch block resident in VMEM.

    x_ref : [TB, 5]          w1_ref: [5, 64]     b1_ref: [1, 64]
    w2_ref: [64, 64]         b2_ref: [1, 64]
    w3_ref: [64, C]          b3_ref: [1, C]
    o_ref : [TB, C]  (softmax probabilities)
    """
    # Layer 1: Linear(5, 64) + ReLU (MXU matmul, f32 accumulate).
    x = x_ref[...].astype(w1_ref.dtype)
    h1 = jnp.dot(x, w1_ref[...], preferred_element_type=jnp.float32)
    h1 = jnp.maximum(h1 + b1_ref[...].astype(jnp.float32), 0.0)

    # Layer 2: Linear(64, 64) + ReLU. Operand dtype follows the weight dtype
    # (bf16 weights -> bf16 MXU operands), accumulation stays f32.
    h2 = jnp.dot(h1.astype(w2_ref.dtype), w2_ref[...], preferred_element_type=jnp.float32)
    h2 = jnp.maximum(h2 + b2_ref[...].astype(jnp.float32), 0.0)

    # Layer 3: Linear(64, num_classes).
    logits = jnp.dot(h2.astype(w3_ref.dtype), w3_ref[...], preferred_element_type=jnp.float32)
    logits = logits + b3_ref[...].astype(jnp.float32)

    # Softmax over dim=1 (classes), numerically stable, f32 math in-kernel.
    m = jnp.max(logits, axis=1, keepdims=True)
    e = jnp.exp(logits - m)
    denom = jnp.sum(e, axis=1, keepdims=True)
    probs = e * pl.reciprocal(denom, approx=False)
    o_ref[...] = probs.astype(o_ref.dtype)


def travel_recommender_forward(x, params, *, block_batch=1024, out_dtype=None):
    """x: [B, 5]; params: dict of (w1,b1,w2,b2,w3,b3). Returns [B, C] softmax probs.

    block_batch: rows per grid step (must be a multiple of 8; only used when
                 B > block_batch). Sized to fit comfortably in scoped VMEM on
                 v5e (16 MiB default) and v7x (64 MiB physical).
    out_dtype:   output dtype (defaults to x.dtype); pass jnp.bfloat16 to cut
                 output HBM traffic if the caller tolerates it.
    """
    w1, b1, w2, b2, w3, b3 = (
        params["w1"], params["b1"], params["w2"], params["b2"], params["w3"], params["b3"]
    )
    B, F = x.shape
    C = w3.shape[1]
    if out_dtype is None:
        out_dtype = x.dtype

    assert block_batch % 8 == 0, "block_batch must be a multiple of 8 (sublane tiling)"

    if B <= block_batch:
        # Single block covering the whole batch (block == full dim, so no
        # divisibility constraint).
        tb = B
        b_pad = B
    else:
        tb = block_batch
        b_pad = ((B + tb - 1) // tb) * tb

    x_in = x if b_pad == B else jnp.pad(x, ((0, b_pad - B), (0, 0)))

    def resident(arr):
        # Constant index_map -> the weight/bias block is DMA'd once and stays
        # resident in VMEM across all grid steps.
        return pl.BlockSpec(arr.shape, lambda i: (0, 0))

    out = pl.pallas_call(
        _mlp_softmax_kernel,
        out_shape=jax.ShapeDtypeStruct((b_pad, C), out_dtype),
        grid=(b_pad // tb,),
        in_specs=[
            pl.BlockSpec((tb, F), lambda i: (i, 0)),   # streamed x tiles
            resident(w1), resident(b1),
            resident(w2), resident(b2),
            resident(w3), resident(b3),
        ],
        out_specs=pl.BlockSpec((tb, C), lambda i: (i, 0)),
        compiler_params=pltpu.CompilerParams(
            dimension_semantics=("parallel",),          # batch axis is independent
            vmem_limit_bytes=32 * 1024 * 1024,
        ),
    )(x_in, w1, b1, w2, b2, w3, b3)

    return out[:B] if b_pad != B else out


def init_params(key, num_classes, dtype=jnp.float32):
    """Deterministic init matching PyTorch layer shapes (weights stored as [in, out])."""
    k1, k2, k3, k4, k5, k6 = jax.random.split(key, 6)

    def uniform_init(k, shape, fan_in):
        bound = 1.0 / jnp.sqrt(fan_in)
        return jax.random.uniform(k, shape, jnp.float32, -bound, bound).astype(dtype)

    return {
        "w1": uniform_init(k1, (IN_FEATURES, HIDDEN), IN_FEATURES),
        "b1": uniform_init(k2, (1, HIDDEN), IN_FEATURES),
        "w2": uniform_init(k3, (HIDDEN, HIDDEN), HIDDEN),
        "b2": uniform_init(k4, (1, HIDDEN), HIDDEN),
        "w3": uniform_init(k5, (HIDDEN, num_classes), HIDDEN),
        "b3": uniform_init(k6, (1, num_classes), HIDDEN),
    }


def _reference_forward(x, params):
    p = {k: v.astype(jnp.float32) for k, v in params.items()}
    h1 = jnp.maximum(x @ p["w1"] + p["b1"], 0.0)
    h2 = jnp.maximum(h1 @ p["w2"] + p["b2"], 0.0)
    logits = h2 @ p["w3"] + p["b3"]
    return jax.nn.softmax(logits, axis=1)


if __name__ == "__main__":
    key = jax.random.PRNGKey(0)
    k_x, k_x2, k_p = jax.random.split(key, 3)

    num_classes = 10
    params = init_params(k_p, num_classes)

    # --- Small-batch check (single block, f32 path) -------------------------
    batch = 8
    x = jax.random.normal(k_x, (batch, IN_FEATURES), dtype=jnp.float32)
    out = jax.block_until_ready(travel_recommender_forward(x, params))
    ref = _reference_forward(x, params)
    assert out.shape == (batch, num_classes)
    assert jnp.allclose(jnp.sum(out, axis=1), 1.0, atol=1e-5)
    assert jnp.allclose(out, ref, atol=1e-5, rtol=1e-5)

    # --- Tiled check: B not a multiple of the block size (exercises padding) -
    batch2 = 300
    x2 = jax.random.normal(k_x2, (batch2, IN_FEATURES), dtype=jnp.float32)
    out2 = jax.block_until_ready(
        travel_recommender_forward(x2, params, block_batch=128)
    )
    ref2 = _reference_forward(x2, params)
    assert out2.shape == (batch2, num_classes)
    assert jnp.allclose(jnp.sum(out2, axis=1), 1.0, atol=1e-5)
    assert jnp.allclose(out2, ref2, atol=1e-5, rtol=1e-5)

    # --- Optional low-precision path: bf16 w2/w3 operands + bf16 output ------
    params_bf16 = dict(params)
    params_bf16["w2"] = params["w2"].astype(jnp.bfloat16)
    params_bf16["w3"] = params["w3"].astype(jnp.bfloat16)
    out_bf16 = jax.block_until_ready(
        travel_recommender_forward(x2, params_bf16, block_batch=128, out_dtype=jnp.bfloat16)
    )
    assert out_bf16.dtype == jnp.bfloat16
    assert jnp.allclose(out_bf16.astype(jnp.float32), ref2, atol=5e-2)

    print("KERNEL_OK")
</pallas_src>

<mosaic_0001>
module attributes {stable_mosaic.version = 11 : i64} {
  func.func @_mlp_softmax_kernel(%arg0: i32, %arg1: memref<8x5xf32, #tpu.memory_space<vmem>>, %arg2: memref<5x64xf32, #tpu.memory_space<vmem>>, %arg3: memref<1x64xf32, #tpu.memory_space<vmem>>, %arg4: memref<64x64xf32, #tpu.memory_space<vmem>>, %arg5: memref<1x64xf32, #tpu.memory_space<vmem>>, %arg6: memref<64x10xf32, #tpu.memory_space<vmem>>, %arg7: memref<1x10xf32, #tpu.memory_space<vmem>>, %arg8: memref<8x10xf32, #tpu.memory_space<vmem>>) attributes {dimension_semantics = [#tpu.dimension_semantics<parallel>], iteration_bounds = array<i64: 1>, scalar_prefetch = 0 : i64, scratch_operands = 0 : i64, tpu.core_type = #tpu.core_type<tc>, window_params = [{transform_indices = @transform_0, window_bounds = array<i64: 8, 5>}, {pipeline_mode = #tpu.pipeline_mode<synchronous>, transform_indices = @transform_1, window_bounds = array<i64: 5, 64>}, {pipeline_mode = #tpu.pipeline_mode<synchronous>, transform_indices = @transform_2, window_bounds = array<i64: 1, 64>}, {pipeline_mode = #tpu.pipeline_mode<synchronous>, transform_indices = @transform_3, window_bounds = array<i64: 64, 64>}, {pipeline_mode = #tpu.pipeline_mode<synchronous>, transform_indices = @transform_4, window_bounds = array<i64: 1, 64>}, {pipeline_mode = #tpu.pipeline_mode<synchronous>, transform_indices = @transform_5, window_bounds = array<i64: 64, 10>}, {pipeline_mode = #tpu.pipeline_mode<synchronous>, transform_indices = @transform_6, window_bounds = array<i64: 1, 10>}, {transform_indices = @transform_7, window_bounds = array<i64: 8, 10>}]} {
    %c0 = arith.constant 0 : index
    %c0_0 = arith.constant 0 : index
    %0 = vector.load %arg1[%c0, %c0_0] : memref<8x5xf32, #tpu.memory_space<vmem>>, vector<8x5xf32>
    %c0_1 = arith.constant 0 : index
    %c0_2 = arith.constant 0 : index
    %1 = vector.load %arg2[%c0_1, %c0_2] : memref<5x64xf32, #tpu.memory_space<vmem>>, vector<5x64xf32>
    %cst = arith.constant dense<0.000000e+00> : vector<8x64xf32>
    %2 = tpu.matmul %0, %1, %cst {dimension_numbers = #tpu.dot_dimension_numbers<[1], [0], [0], [1], [0, 0, 1, 1], [], []>} : vector<8x5xf32>, vector<5x64xf32>, vector<8x64xf32> -> vector<8x64xf32>
    %c0_3 = arith.constant 0 : index
    %c0_4 = arith.constant 0 : index
    %3 = vector.load %arg3[%c0_3, %c0_4] : memref<1x64xf32, #tpu.memory_space<vmem>>, vector<1x64xf32>
    %4 = vector.broadcast %3 : vector<1x64xf32> to vector<8x64xf32>
    %5 = arith.addf %2, %4 : vector<8x64xf32>
    %cst_5 = arith.constant 0.000000e+00 : f32
    %6 = vector.broadcast %cst_5 : f32 to vector<8x64xf32>
    %7 = arith.maximumf %5, %6 : vector<8x64xf32>
    %c0_6 = arith.constant 0 : index
    %c0_7 = arith.constant 0 : index
    %8 = vector.load %arg4[%c0_6, %c0_7] : memref<64x64xf32, #tpu.memory_space<vmem>>, vector<64x64xf32>
    %cst_8 = arith.constant dense<0.000000e+00> : vector<8x64xf32>
    %9 = tpu.matmul %7, %8, %cst_8 {dimension_numbers = #tpu.dot_dimension_numbers<[1], [0], [0], [1], [0, 0, 1, 1], [], []>} : vector<8x64xf32>, vector<64x64xf32>, vector<8x64xf32> -> vector<8x64xf32>
    %c0_9 = arith.constant 0 : index
    %c0_10 = arith.constant 0 : index
    %10 = vector.load %arg5[%c0_9, %c0_10] : memref<1x64xf32, #tpu.memory_space<vmem>>, vector<1x64xf32>
    %11 = vector.broadcast %10 : vector<1x64xf32> to vector<8x64xf32>
    %12 = arith.addf %9, %11 : vector<8x64xf32>
    %cst_11 = arith.constant 0.000000e+00 : f32
    %13 = vector.broadcast %cst_11 : f32 to vector<8x64xf32>
    %14 = arith.maximumf %12, %13 : vector<8x64xf32>
    %c0_12 = arith.constant 0 : index
    %c0_13 = arith.constant 0 : index
    %15 = vector.load %arg6[%c0_12, %c0_13] : memref<64x10xf32, #tpu.memory_space<vmem>>, vector<64x10xf32>
    %cst_14 = arith.constant dense<0.000000e+00> : vector<8x10xf32>
    %16 = tpu.matmul %14, %15, %cst_14 {dimension_numbers = #tpu.dot_dimension_numbers<[1], [0], [0], [1], [0, 0, 1, 1], [], []>} : vector<8x64xf32>, vector<64x10xf32>, vector<8x10xf32> -> vector<8x10xf32>
    %c0_15 = arith.constant 0 : index
    %c0_16 = arith.constant 0 : index
    %17 = vector.load %arg7[%c0_15, %c0_16] : memref<1x10xf32, #tpu.memory_space<vmem>>, vector<1x10xf32>
    %18 = vector.broadcast %17 : vector<1x10xf32> to vector<8x10xf32>
    %19 = arith.addf %16, %18 : vector<8x10xf32>
    %cst_17 = arith.constant dense<0xFF800000> : vector<8xf32>
    %20 = vector.multi_reduction <maximumf>, %19, %cst_17 [1] : vector<8x10xf32> to vector<8xf32>
    %21 = vector.shape_cast %20 : vector<8xf32> to vector<8x1xf32>
    %22 = vector.broadcast %21 : vector<8x1xf32> to vector<8x10xf32>
    %23 = arith.subf %19, %22 : vector<8x10xf32>
    %24 = math.exp %23 : vector<8x10xf32>
    %cst_18 = arith.constant dense<0.000000e+00> : vector<8xf32>
    %25 = vector.multi_reduction <add>, %24, %cst_18 [1] : vector<8x10xf32> to vector<8xf32>
    %26 = vector.shape_cast %25 : vector<8xf32> to vector<8x1xf32>
    %27 = tpu.reciprocal %26 : vector<8x1xf32> -> vector<8x1xf32>
    %28 = vector.broadcast %27 : vector<8x1xf32> to vector<8x10xf32>
    %29 = arith.mulf %24, %28 : vector<8x10xf32>
    %c0_19 = arith.constant 0 : index
    %c0_20 = arith.constant 0 : index
    %30 = vector.load %arg8[%c0_19, %c0_20] : memref<8x10xf32, #tpu.memory_space<vmem>>, vector<8x10xf32>
    tpu.vector_store %arg8[%c0_19, %c0_20], %29 {strides = array<i32>} : memref<8x10xf32, #tpu.memory_space<vmem>>, vector<8x10xf32>,
    return
  }
  func.func @transform_0(%arg0: i32) -> (i32, i32) {
    %c0_i32 = arith.constant 0 : i32
    %c0_i32_0 = arith.constant 0 : i32
    return %arg0, %c0_i32 : i32, i32
  }
  func.func @transform_1(%arg0: i32) -> (i32, i32) {
    %c0_i32 = arith.constant 0 : i32
    %c0_i32_0 = arith.constant 0 : i32
    %c0_i32_1 = arith.constant 0 : i32
    return %c0_i32, %c0_i32_0 : i32, i32
  }
  func.func @transform_2(%arg0: i32) -> (i32, i32) {
    %c0_i32 = arith.constant 0 : i32
    %c0_i32_0 = arith.constant 0 : i32
    %c0_i32_1 = arith.constant 0 : i32
    return %c0_i32, %c0_i32_0 : i32, i32
  }
  func.func @transform_3(%arg0: i32) -> (i32, i32) {
    %c0_i32 = arith.constant 0 : i32
    %c0_i32_0 = arith.constant 0 : i32
    %c0_i32_1 = arith.constant 0 : i32
    return %c0_i32, %c0_i32_0 : i32, i32
  }
  func.func @transform_4(%arg0: i32) -> (i32, i32) {
    %c0_i32 = arith.constant 0 : i32
    %c0_i32_0 = arith.constant 0 : i32
    %c0_i32_1 = arith.constant 0 : i32
    return %c0_i32, %c0_i32_0 : i32, i32
  }
  func.func @transform_5(%arg0: i32) -> (i32, i32) {
    %c0_i32 = arith.constant 0 : i32
    %c0_i32_0 = arith.constant 0 : i32
    %c0_i32_1 = arith.constant 0 : i32
    return %c0_i32, %c0_i32_0 : i32, i32
  }
  func.func @transform_6(%arg0: i32) -> (i32, i32) {
    %c0_i32 = arith.constant 0 : i32
    %c0_i32_0 = arith.constant 0 : i32
    %c0_i32_1 = arith.constant 0 : i32
    return %c0_i32, %c0_i32_0 : i32, i32
  }
  func.func @transform_7(%arg0: i32) -> (i32, i32) {
    %c0_i32 = arith.constant 0 : i32
    %c0_i32_0 = arith.constant 0 : i32
    return %arg0, %c0_i32 : i32, i32
  }
}

</mosaic_0001>

<bundles_post_ra>
// kernel: tpu_custom_call.1
= control target key start
LH: loop header
LB: loop body
LE: loop exit
PB: predicated region body
PF: predicated region fallthrough
CT: control target
= control target key end

     0   :  { %vm40_vm0 = vcmask 1044480   ;;  %v446_v2 = vmov 0.0   ;;  %vm447_vm1 = vmmov 0   ;;  %vm36_vm2 = vcmask 39936   ;;  %s571_s0 = inlined_call_operand.vmem [shape: f32[8,5], index: 0, kind: input, shape index: {}]   ;;  %s572_s1 = inlined_call_operand.vmem [shape: f32[5,64], index: 1, kind: input, shape index: {}]   ;;  %s573_s2 = inlined_call_operand.vmem [shape: f32[1,64], index: 2, kind: input, shape index: {}]   ;;  %s574_s3 = inlined_call_operand.vmem [shape: f32[64,64], index: 3, kind: input, shape index: {}]   ;;  %s575_s4 = inlined_call_operand.vmem [shape: f32[1,64], index: 4, kind: input, shape index: {}]   ;;  %s576_s5 = inlined_call_operand.vmem [shape: f32[64,10], index: 5, kind: input, shape index: {}]   ;;  %s577_s6 = inlined_call_operand.vmem [shape: f32[1,10], index: 6, kind: input, shape index: {}]   ;;  %s578_s7 = inlined_call_operand.hbm [shape: f32[8,10], index: 7, kind: output, shape index: {}]  }
   0x1   :  { %v28_v0 = vld [vmem:[%s572_s1] sm:$0x1f]  ;;  %347 = vmatprep.subr.mxu0 %v446_v2  ;;  %349 = vmatprep.mubr.msk.f32.mxu0 %vm447_vm1, %v446_v2  ;;  %v116_v4 = vld [vmem:[%s574_s3 + $0x8] sm:$0xff]  ;;  %v117_v5 = vld [vmem:[%s574_s3 + $0x10] sm:$0xff]  ;;  %v448_v6 = vmov 0.0|0.0  }
   0x2   :  { %v27_v1 = vld [vmem:[%s571_s0] sm:$0xff]  ;;  %348 = vmatpush3.msk.msra.mxu0 %vm40_vm0, %v28_v0  ;;  %390 = vmatprep.subr.bf16.mxu1 %v448_v6  ;;  %v118_v8 = vld [vmem:[%s574_s3 + $0x18] sm:$0xff] }
   0x3   :  { %v115_v3 = vld [vmem:[%s574_s3] sm:$0xff]  ;;  %350 = vmatmul.mubr.msk.f32.vlgmr.msra.gmra.mrb[0].mxu0 %vm36_vm2, %v27_v1  ;;  %368 = vmatprep.mubr.msk.f32.mxu1 %vm447_vm1, %v446_v2 }
   0x4   :  { %v391_v7 = vpack.c.bf16 %v116_v4, %v115_v3 }
   0x5   :  { %12 = vsyncpa [#allocation3], 0  ;;  %v394_v9 = vpack.c.bf16 %v118_v8, %v117_v5  ;;  %402 = vmatprep.subr.bf16.mxu0 %v448_v6  ;;  %v119_v10 = vld [vmem:[%s574_s3 + $0x20] sm:$0xff]  ;;  %v120_v11 = vld [vmem:[%s574_s3 + $0x28] sm:$0xff]  ;;  %387 = vmatprep.mubr.msk.f32.mxu0 %vm447_vm1, %v446_v2  ;;  %vm130_vm3 = vcmask 523264   ;;  %vm293_vm4 = vcmask 80896  }
   0x6   :  { %392 = vmatpush3.bf16.msra.mxu1 %v391_v7  ;;  %v397_v12 = vpack.c.bf16 %v120_v11, %v119_v10  ;;  %v121_v13 = vld [vmem:[%s574_s3 + $0x30] sm:$0xff]  ;;  %v122_v14 = vld [vmem:[%s574_s3 + $0x38] sm:$0xff]  ;;  %v205_v16 = vld [vmem:[%s576_s5] sm:$0xff] }
   0x7   :  { %393 = vmatprep.subr.bf16.mxu1 %v448_v6  ;;  %v400_v15 = vpack.c.bf16 %v122_v14, %v121_v13  ;;  %v206_v17 = vld [vmem:[%s576_s5 + $0x8] sm:$0xff]  ;;  %v207_v18 = vld [vmem:[%s576_s5 + $0x10] sm:$0xff]  ;;  %v208_v20 = vld [vmem:[%s576_s5 + $0x18] sm:$0xff] }
   0x8   :  { %v403_v19 = vpack.c.bf16 %v206_v17, %v205_v16  ;;  %v406_v21 = vpack.c.bf16 %v208_v20, %v207_v18  ;;  %v209_v22 = vld [vmem:[%s576_s5 + $0x20] sm:$0xff]  ;;  %v210_v23 = vld [vmem:[%s576_s5 + $0x28] sm:$0xff]  ;;  %v211_v30 = vld [vmem:[%s576_s5 + $0x30] sm:$0xff] }
   0x9   :  { %v409_v24 = vpack.c.bf16 %v210_v23, %v209_v22  ;;  %v320_v25 = vld [vmem:[%s573_s2] ss:$0 sm:$0xff]  ;;  %v212_v31 = vld [vmem:[%s576_s5 + $0x38] sm:$0xff] }
   0xa   :  { %395 = vmatpush3.bf16.msra.mxu1 %v394_v9  ;;  %404 = vmatpush3.bf16.msra.mxu0 %v403_v19  ;;  %v412_v32 = vpack.c.bf16 %v212_v31, %v211_v30  ;;  %v323_v33 = vld [vmem:[%s575_s4] ss:$0 sm:$0xff]  ;;  %s449_s4 = smov [#allocation2]  }
   0xb   :  { %396 = vmatprep.subr.bf16.mxu1 %v448_v6  ;;  %405 = vmatprep.subr.bf16.mxu0 %v448_v6  ;;  %v325_v38 = vld [vmem:[%s577_s6] ss:$0 sm:$0xff]  ;;  %s312_s5 = sshll.u32 %s449_s4, 4  ;;  %s313_s5 = int_to_ptr.vmem [resolvable:$true] %s312_s5 }
   0xc   :  { %s422_s6 = scalar_lea.vmem %s313_s5, 128  ;;  %p427_p1 = scmp.lt.s32.totalorder %s313_s5, %s313_s5 }
   0xd   :  { %p423_p0 = scmp.ne.s32.totalorder %s313_s5, %s422_s6  ;;  %p428_p2 = scmp.lt.s32.totalorder %s422_s6, %s422_s6 }
   0xe   :  { %398 = vmatpush3.bf16.msra.mxu1 %v397_v12  ;;  %407 = vmatpush3.bf16.msra.mxu0 %v406_v21 }
   0xf   :  { %399 = vmatprep.subr.bf16.mxu1 %v448_v6  ;;  %408 = vmatprep.subr.bf16.mxu0 %v448_v6  ;;  %p429_p3 = por %p428_p2, %p427_p1 }
  0x11   :  { %p430_p4 = pnand %p429_p3, %p423_p0 }
  0x12   :  { %401 = vmatpush3.bf16.msra.mxu1 %v400_v15  ;;  %410 = vmatpush3.bf16.msra.mxu0 %v409_v24 }
  0x13   :  { %411 = vmatprep.subr.bf16.mxu0 %v448_v6 }
  0x16   :  { %413 = vmatpush3.bf16.msra.mxu0 %v412_v32 }
  0xd6   :  { %v110_v26 = vpop.f32.mrb[0].mxu0 }
  0xd7   :  { %v111_v27 = vadd.f32 %v320_v25, %v110_v26  ;;  %v351_v28 = vpop.f32.mrb[1].mxu0 }
  0xd9   :  { %v114_v29 = vmax.f32 %v111_v27, 0.0 }
  0xdb   :  { %369 = vmatmul.mubr.msk.f32.vlgmr.msra.gmra.mrb[0].mxu1 %vm130_vm3, %v114_v29 }
 0x1ae   :  { %v200_v34 = vpop.f32.mrb[0].mxu1 }
 0x1af   :  { %v201_v35 = vadd.f32 %v323_v33, %v200_v34  ;;  %v370_v36 = vpop.f32.mrb[1].mxu1 }
 0x1b1   :  { %v204_v37 = vmax.f32 %v201_v35, 0.0 }
 0x1b3   :  { %388 = vmatmul.mubr.msk.f32.vlgmr.msra.gmra.mrb[2].mxu0 %vm130_vm3, %v204_v37 }
 0x286   :  { %v289_v39 = vpop.f32.mrb[2].mxu0 }
 0x287   :  { %v290_v40 = vadd.f32 %v325_v38, %v289_v39  ;;  %v389_v41 = vpop.f32.mrb[3].mxu0 }
 0x289   :  { %v294_v42 = vsel %vm293_vm4, %v290_v40, -inf }
 0x28a   :  { %295 = vmax.xlane.f32.xlu0 %v294_v42 }
 0x317   :  { %v296_v43 = vpop.xlane.xlu0 %295 }
 0x318   :  { %v297_v44 = vsub.f32 %v290_v40, %v296_v43 }
 0x31a   :  { %v298_v45 = vmul.f32 1.442695, %v297_v44 }
 0x31c   :  { %418 = vpow2.f32 %v298_v45 }
 0x326   :  { %v419_v46 = vpop.eup %418 }
 0x327   :  { %v300_v47 = vsel %vm293_vm4, %v419_v46, 0.0 }
 0x328   :  { %301 = vadd.xlane.f32.xlu0 %v300_v47 }
 0x3b5   :  { %v302_v48 = vpop.xlane.xlu0 %301 }
 0x3b6   :  { %420 = vrcp.f32 %v302_v48 }
 0x3c0   :  { %v421_v49 = vpop.eup %420 }
 0x3c1   :  { %v304_v50 = vmul.f32 %v421_v49, %v419_v46 }
 0x3c3   :  { %305 = vst.msk [vmem:[#allocation2] sm:$0xff] %vm293_vm4, %v304_v50 }
 0x3c4   :  { %433 = shalt.err (!%p430_p4)
}
 0x3c5   :  { %s434_s16 = scalar_lea.hbm %s578_s7, 128 }
 0x3c6   :  { %p435_p5 = scmp.ne.s32.totalorder %s578_s7, %s434_s16  ;;  %p438_p6 = scmp.lt.u32.totalorder %s434_s16, %s578_s7 }
 0x3c8   :  { %p440_p7 = pnand %p438_p6, %p435_p5 }
 0x3ca   :  { %443 = shalt.err (!%p440_p7)
}
 0x3cb   :  { %315 = dma.vmem_to_hbm [thread:$0]  %s313_s5, 128, %s578_s7, [#allocation3]  }
 0x3cc   :  { %444 = dma.done.wait [#allocation3], 128  }
 0x3cd   :  { %445 = vsyncadd [#allocation3], 4294967168 }
 0x3ce   :  { %319 = vsyncpa [#allocation3], 1 }

</bundles_post_ra>
